<compile_context>
chip_gen: v7x
topology: tpu7x:2x2x1
jax: 0.10.0
libtpu: 0.0.40
codegen_flags: <defaults>
</compile_context>

<pallas_src>
import jax
import jax.numpy as jnp
from jax.experimental import pallas as pl
from jax.experimental.pallas import tpu as pltpu

HIDDEN_DIM = 32
LN_EPS = 1e-5  # nn.LayerNorm default


# ----------------------------------------------------------------------------
# elementwise helpers (usable both inside the kernel and in the JAX reference)
# ----------------------------------------------------------------------------
def _gelu(x):
    # tanh-approx GELU (see TODO(synk) above).
    return 0.5 * x * (1.0 + jnp.tanh(0.7978845608028654 * (x + 0.044715 * x * x * x)))


def _layernorm(x, gamma, beta):
    mean = jnp.mean(x, axis=-1, keepdims=True)
    xc = x - mean
    var = jnp.mean(xc * xc, axis=-1, keepdims=True)
    return xc * jax.lax.rsqrt(var + LN_EPS) * gamma + beta


# ----------------------------------------------------------------------------
# Fused Pallas kernel: one batch element per grid step, all weights resident
# ----------------------------------------------------------------------------
def _pattern_matcher_kernel(
    x_ref,                                  # (1, S, D)
    pw_ref, pb_ref, pg_ref, pbe_ref,        # pattern_proj: (3,D,D),(3,D),(3,D),(3,D)
    aw1_ref, ab1_ref, aw2_ref, ab2_ref,     # align: (3,D,D),(1,D),(D,3),(1,3)
    ew1_ref, eb1_ref, eg1_ref, ebe1_ref,    # enhance part 1: (D,2D),(1,2D),(1,2D),(1,2D)
    ew2_ref, eb2_ref, eg2_ref, ebe2_ref,    # enhance part 2: (2D,D),(1,D),(1,D),(1,D)
    o_ref,                                  # (1, S, D)
):
    x = x_ref[0]                            # (S, D) f32
    pb = pb_ref[...]
    pg = pg_ref[...]
    pbe = pbe_ref[...]

    # --- 3 pattern projections: Linear -> LayerNorm -> GELU ------------------
    pats = []
    means = []
    for i in range(3):
        h = jnp.dot(x, pw_ref[i], preferred_element_type=jnp.float32)
        h = h + pb[i:i + 1, :]
        h = _layernorm(h, pg[i:i + 1, :], pbe[i:i + 1, :])
        h = _gelu(h)
        pats.append(h)                                        # (S, D)
        means.append(jnp.mean(h, axis=0, keepdims=True))      # (1, D) mean over seq

    # --- align head: Linear(3D->D) as 3 partial matmuls, GELU, Linear(D->3),
    #     softmax over the 3 pattern weights ---------------------------------
    a = ab1_ref[...]                                          # (1, D)
    for i in range(3):
        a = a + jnp.dot(means[i], aw1_ref[i], preferred_element_type=jnp.float32)
    a = _gelu(a)
    logits = jnp.dot(a, aw2_ref[...], preferred_element_type=jnp.float32)
    logits = logits + ab2_ref[...]                            # (1, 3)
    logits = logits - jnp.max(logits, axis=-1, keepdims=True)
    e = jnp.exp(logits)
    w = e / jnp.sum(e, axis=-1, keepdims=True)                # (1, 3)

    # --- weighted combination of the 3 patterns ------------------------------
    combined = (w[:, 0:1] * pats[0]
                + w[:, 1:2] * pats[1]
                + w[:, 2:3] * pats[2])                        # (S, D)

    # --- enhance: Linear -> LN -> GELU -> (Dropout: eval identity)
    #              -> Linear -> LN, then residual ----------------------------
    h = jnp.dot(combined, ew1_ref[...], preferred_element_type=jnp.float32)
    h = h + eb1_ref[...]
    h = _layernorm(h, eg1_ref[...], ebe1_ref[...])
    h = _gelu(h)
    # TODO(synk): nn.Dropout(0.1) skipped (eval-mode semantics).
    h = jnp.dot(h, ew2_ref[...], preferred_element_type=jnp.float32)
    h = h + eb2_ref[...]
    h = _layernorm(h, eg2_ref[...], ebe2_ref[...])

    o_ref[0] = h + x


def pattern_matcher_forward(p, x):
    """x: (B, S, D) f32 -> (B, S, D) f32, matching PatternMatcher.forward."""
    B, S, D = x.shape

    args = (
        x.astype(jnp.float32),
        p["pp_w"], p["pp_b"], p["pp_ln_g"], p["pp_ln_b"],
        p["al_w1"], p["al_b1"], p["al_w2"], p["al_b2"],
        p["en_w1"], p["en_b1"], p["en_ln1_g"], p["en_ln1_b"],
        p["en_w2"], p["en_b2"], p["en_ln2_g"], p["en_ln2_b"],
    )

    def _full_spec(a):
        if a.ndim == 3:
            return pl.BlockSpec(a.shape, lambda b: (0, 0, 0))
        return pl.BlockSpec(a.shape, lambda b: (0, 0))

    in_specs = [pl.BlockSpec((1, S, D), lambda b: (b, 0, 0))]
    in_specs += [_full_spec(a) for a in args[1:]]

    return pl.pallas_call(
        _pattern_matcher_kernel,
        out_shape=jax.ShapeDtypeStruct((B, S, D), jnp.float32),
        grid=(B,),
        in_specs=in_specs,
        out_specs=pl.BlockSpec((1, S, D), lambda b: (b, 0, 0)),
        compiler_params=pltpu.CompilerParams(dimension_semantics=("parallel",)),
    )(*args)


# ----------------------------------------------------------------------------
# Deterministic synthetic parameters.
# Linear weights are stored in (in, out) orientation (transpose of PyTorch's
# (out, in)); the computation is identical.
# ----------------------------------------------------------------------------
def init_params(key, d):
    keys = iter(jax.random.split(key, 8))

    def w(shape, scale=0.02):
        return jax.random.normal(next(keys), shape, jnp.float32) * scale

    z = lambda s: jnp.zeros(s, jnp.float32)
    o = lambda s: jnp.ones(s, jnp.float32)

    p = {}
    # pattern_proj: 3 x (Linear(d,d) -> LayerNorm(d) -> GELU), stacked on axis 0
    p["pp_w"], p["pp_b"] = w((3, d, d)), z((3, d))
    p["pp_ln_g"], p["pp_ln_b"] = o((3, d)), z((3, d))
    # align: Linear(3d,d) stored as three (d,d) blocks, GELU, Linear(d,3), Softmax
    p["al_w1"], p["al_b1"] = w((3, d, d)), z((1, d))
    p["al_w2"], p["al_b2"] = w((d, 3)), z((1, 3))
    # enhance: Linear(d,2d) -> LN(2d) -> GELU -> Dropout -> Linear(2d,d) -> LN(d)
    p["en_w1"], p["en_b1"] = w((d, 2 * d)), z((1, 2 * d))
    p["en_ln1_g"], p["en_ln1_b"] = o((1, 2 * d)), z((1, 2 * d))
    p["en_w2"], p["en_b2"] = w((2 * d, d)), z((1, d))
    p["en_ln2_g"], p["en_ln2_b"] = o((1, d)), z((1, d))
    return p


# ----------------------------------------------------------------------------
# Pure-JAX reference (same math, same tanh GELU) for a correctness self-check
# ----------------------------------------------------------------------------
def _ref_forward(p, x):
    pats = []
    for i in range(3):
        h = x @ p["pp_w"][i] + p["pp_b"][i]
        h = _gelu(_layernorm(h, p["pp_ln_g"][i], p["pp_ln_b"][i]))
        pats.append(h)
    means = [jnp.mean(h, axis=1) for h in pats]              # (B, D)
    a = p["al_b1"]
    for i in range(3):
        a = a + means[i] @ p["al_w1"][i]
    a = _gelu(a)
    logits = a @ p["al_w2"] + p["al_b2"]                     # (B, 3)
    wts = jax.nn.softmax(logits, axis=-1)
    combined = sum(wts[:, None, i:i + 1] * pats[i] for i in range(3))
    h = combined @ p["en_w1"] + p["en_b1"]
    h = _gelu(_layernorm(h, p["en_ln1_g"], p["en_ln1_b"]))
    h = h @ p["en_w2"] + p["en_b2"]
    h = _layernorm(h, p["en_ln2_g"], p["en_ln2_b"])
    return h + x


if __name__ == "__main__":
    key = jax.random.PRNGKey(0)
    pkey, xkey = jax.random.split(key)
    D = HIDDEN_DIM
    params = init_params(pkey, D)
    x = jax.random.normal(xkey, (2, 8, D), jnp.float32)       # (batch, seq, hidden)

    fwd = jax.jit(pattern_matcher_forward)
    out = jax.block_until_ready(fwd(params, x))

    assert out.shape == (2, 8, D), out.shape
    assert bool(jnp.all(jnp.isfinite(out)))

    ref = _ref_forward(params, x)
    err = float(jnp.max(jnp.abs(out - ref)))
    assert err < 2e-3, f"max abs err vs JAX reference: {err}"

    print("KERNEL_OK")
</pallas_src>

<mosaic_0001>
module attributes {stable_mosaic.version = 11 : i64} {
  func.func @_pattern_matcher_kernel(%arg0: i32, %arg1: memref<1x8x32xf32, #tpu.memory_space<vmem>>, %arg2: memref<3x32x32xf32, #tpu.memory_space<vmem>>, %arg3: memref<3x32xf32, #tpu.memory_space<vmem>>, %arg4: memref<3x32xf32, #tpu.memory_space<vmem>>, %arg5: memref<3x32xf32, #tpu.memory_space<vmem>>, %arg6: memref<3x32x32xf32, #tpu.memory_space<vmem>>, %arg7: memref<1x32xf32, #tpu.memory_space<vmem>>, %arg8: memref<32x3xf32, #tpu.memory_space<vmem>>, %arg9: memref<1x3xf32, #tpu.memory_space<vmem>>, %arg10: memref<32x64xf32, #tpu.memory_space<vmem>>, %arg11: memref<1x64xf32, #tpu.memory_space<vmem>>, %arg12: memref<1x64xf32, #tpu.memory_space<vmem>>, %arg13: memref<1x64xf32, #tpu.memory_space<vmem>>, %arg14: memref<64x32xf32, #tpu.memory_space<vmem>>, %arg15: memref<1x32xf32, #tpu.memory_space<vmem>>, %arg16: memref<1x32xf32, #tpu.memory_space<vmem>>, %arg17: memref<1x32xf32, #tpu.memory_space<vmem>>, %arg18: memref<1x8x32xf32, #tpu.memory_space<vmem>>) attributes {dimension_semantics = [#tpu.dimension_semantics<parallel>], iteration_bounds = array<i64: 2>, scalar_prefetch = 0 : i64, scratch_operands = 0 : i64, tpu.core_type = #tpu.core_type<tc>, window_params = [{transform_indices = @transform_0, window_bounds = array<i64: 1, 8, 32>}, {pipeline_mode = #tpu.pipeline_mode<synchronous>, transform_indices = @transform_1, window_bounds = array<i64: 3, 32, 32>}, {pipeline_mode = #tpu.pipeline_mode<synchronous>, transform_indices = @transform_2, window_bounds = array<i64: 3, 32>}, {pipeline_mode = #tpu.pipeline_mode<synchronous>, transform_indices = @transform_3, window_bounds = array<i64: 3, 32>}, {pipeline_mode = #tpu.pipeline_mode<synchronous>, transform_indices = @transform_4, window_bounds = array<i64: 3, 32>}, {pipeline_mode = #tpu.pipeline_mode<synchronous>, transform_indices = @transform_5, window_bounds = array<i64: 3, 32, 32>}, {pipeline_mode = #tpu.pipeline_mode<synchronous>, transform_indices = @transform_6, window_bounds = array<i64: 1, 32>}, {pipeline_mode = #tpu.pipeline_mode<synchronous>, transform_indices = @transform_7, window_bounds = array<i64: 32, 3>}, {pipeline_mode = #tpu.pipeline_mode<synchronous>, transform_indices = @transform_8, window_bounds = array<i64: 1, 3>}, {pipeline_mode = #tpu.pipeline_mode<synchronous>, transform_indices = @transform_9, window_bounds = array<i64: 32, 64>}, {pipeline_mode = #tpu.pipeline_mode<synchronous>, transform_indices = @transform_10, window_bounds = array<i64: 1, 64>}, {pipeline_mode = #tpu.pipeline_mode<synchronous>, transform_indices = @transform_11, window_bounds = array<i64: 1, 64>}, {pipeline_mode = #tpu.pipeline_mode<synchronous>, transform_indices = @transform_12, window_bounds = array<i64: 1, 64>}, {pipeline_mode = #tpu.pipeline_mode<synchronous>, transform_indices = @transform_13, window_bounds = array<i64: 64, 32>}, {pipeline_mode = #tpu.pipeline_mode<synchronous>, transform_indices = @transform_14, window_bounds = array<i64: 1, 32>}, {pipeline_mode = #tpu.pipeline_mode<synchronous>, transform_indices = @transform_15, window_bounds = array<i64: 1, 32>}, {pipeline_mode = #tpu.pipeline_mode<synchronous>, transform_indices = @transform_16, window_bounds = array<i64: 1, 32>}, {transform_indices = @transform_17, window_bounds = array<i64: 1, 8, 32>}]} {
    %c0 = arith.constant 0 : index
    %c0_0 = arith.constant 0 : index
    %c0_1 = arith.constant 0 : index
    %0 = vector.load %arg1[%c0, %c0_0, %c0_1] : memref<1x8x32xf32, #tpu.memory_space<vmem>>, vector<1x8x32xf32>
    %1 = vector.shape_cast %0 : vector<1x8x32xf32> to vector<8x32xf32>
    %c0_2 = arith.constant 0 : index
    %c0_3 = arith.constant 0 : index
    %2 = vector.load %arg3[%c0_2, %c0_3] : memref<3x32xf32, #tpu.memory_space<vmem>>, vector<3x32xf32>
    %c0_4 = arith.constant 0 : index
    %c0_5 = arith.constant 0 : index
    %3 = vector.load %arg4[%c0_4, %c0_5] : memref<3x32xf32, #tpu.memory_space<vmem>>, vector<3x32xf32>
    %c0_6 = arith.constant 0 : index
    %c0_7 = arith.constant 0 : index
    %4 = vector.load %arg5[%c0_6, %c0_7] : memref<3x32xf32, #tpu.memory_space<vmem>>, vector<3x32xf32>
    %c0_8 = arith.constant 0 : index
    %c0_9 = arith.constant 0 : index
    %c0_10 = arith.constant 0 : index
    %5 = vector.load %arg2[%c0_8, %c0_9, %c0_10] : memref<3x32x32xf32, #tpu.memory_space<vmem>>, vector<1x32x32xf32>
    %6 = vector.shape_cast %5 : vector<1x32x32xf32> to vector<32x32xf32>
    %cst = arith.constant dense<0.000000e+00> : vector<8x32xf32>
    %7 = tpu.matmul %1, %6, %cst {dimension_numbers = #tpu.dot_dimension_numbers<[1], [0], [0], [1], [0, 0, 1, 1], [], []>} : vector<8x32xf32>, vector<32x32xf32>, vector<8x32xf32> -> vector<8x32xf32>
    %8 = vector.extract_strided_slice %2 {offsets = [0, 0], sizes = [1, 32], strides = [1, 1]} : vector<3x32xf32> to vector<1x32xf32>
    %9 = vector.broadcast %8 : vector<1x32xf32> to vector<8x32xf32>
    %10 = arith.addf %7, %9 : vector<8x32xf32>
    %11 = vector.extract_strided_slice %3 {offsets = [0, 0], sizes = [1, 32], strides = [1, 1]} : vector<3x32xf32> to vector<1x32xf32>
    %12 = vector.extract_strided_slice %4 {offsets = [0, 0], sizes = [1, 32], strides = [1, 1]} : vector<3x32xf32> to vector<1x32xf32>
    %cst_11 = arith.constant dense<0.000000e+00> : vector<8xf32>
    %13 = vector.multi_reduction <add>, %10, %cst_11 [1] : vector<8x32xf32> to vector<8xf32>
    %14 = vector.shape_cast %13 : vector<8xf32> to vector<8x1xf32>
    %cst_12 = arith.constant 3.200000e+01 : f32
    %15 = vector.broadcast %cst_12 : f32 to vector<8x1xf32>
    %16 = arith.divf %14, %15 : vector<8x1xf32>
    %17 = vector.broadcast %16 : vector<8x1xf32> to vector<8x32xf32>
    %18 = arith.subf %10, %17 : vector<8x32xf32>
    %19 = arith.mulf %18, %18 : vector<8x32xf32>
    %cst_13 = arith.constant dense<0.000000e+00> : vector<8xf32>
    %20 = vector.multi_reduction <add>, %19, %cst_13 [1] : vector<8x32xf32> to vector<8xf32>
    %21 = vector.shape_cast %20 : vector<8xf32> to vector<8x1xf32>
    %cst_14 = arith.constant 3.200000e+01 : f32
    %22 = vector.broadcast %cst_14 : f32 to vector<8x1xf32>
    %23 = arith.divf %21, %22 : vector<8x1xf32>
    %cst_15 = arith.constant 9.99999974E-6 : f32
    %24 = vector.broadcast %cst_15 : f32 to vector<8x1xf32>
    %25 = arith.addf %23, %24 : vector<8x1xf32>
    %26 = math.rsqrt %25 : vector<8x1xf32>
    %27 = vector.broadcast %26 : vector<8x1xf32> to vector<8x32xf32>
    %28 = arith.mulf %18, %27 : vector<8x32xf32>
    %29 = vector.broadcast %11 : vector<1x32xf32> to vector<8x32xf32>
    %30 = arith.mulf %28, %29 : vector<8x32xf32>
    %31 = vector.broadcast %12 : vector<1x32xf32> to vector<8x32xf32>
    %32 = arith.addf %30, %31 : vector<8x32xf32>
    %cst_16 = arith.constant 5.000000e-01 : f32
    %33 = vector.broadcast %cst_16 : f32 to vector<8x32xf32>
    %34 = arith.mulf %33, %32 : vector<8x32xf32>
    %cst_17 = arith.constant 4.471500e-02 : f32
    %35 = vector.broadcast %cst_17 : f32 to vector<8x32xf32>
    %36 = arith.mulf %35, %32 : vector<8x32xf32>
    %37 = arith.mulf %36, %32 : vector<8x32xf32>
    %38 = arith.mulf %37, %32 : vector<8x32xf32>
    %39 = arith.addf %32, %38 : vector<8x32xf32>
    %cst_18 = arith.constant 0.797884583 : f32
    %40 = vector.broadcast %cst_18 : f32 to vector<8x32xf32>
    %41 = arith.mulf %40, %39 : vector<8x32xf32>
    %42 = math.tanh %41 : vector<8x32xf32>
    %cst_19 = arith.constant 1.000000e+00 : f32
    %43 = vector.broadcast %cst_19 : f32 to vector<8x32xf32>
    %44 = arith.addf %43, %42 : vector<8x32xf32>
    %45 = arith.mulf %34, %44 : vector<8x32xf32>
    %cst_20 = arith.constant dense<0.000000e+00> : vector<32xf32>
    %46 = vector.multi_reduction <add>, %45, %cst_20 [0] : vector<8x32xf32> to vector<32xf32>
    %47 = vector.shape_cast %46 : vector<32xf32> to vector<1x32xf32>
    %cst_21 = arith.constant 8.000000e+00 : f32
    %48 = vector.broadcast %cst_21 : f32 to vector<1x32xf32>
    %49 = arith.divf %47, %48 : vector<1x32xf32>
    %c1 = arith.constant 1 : index
    %c0_22 = arith.constant 0 : index
    %c0_23 = arith.constant 0 : index
    %50 = vector.load %arg2[%c1, %c0_22, %c0_23] : memref<3x32x32xf32, #tpu.memory_space<vmem>>, vector<1x32x32xf32>
    %51 = vector.shape_cast %50 : vector<1x32x32xf32> to vector<32x32xf32>
    %cst_24 = arith.constant dense<0.000000e+00> : vector<8x32xf32>
    %52 = tpu.matmul %1, %51, %cst_24 {dimension_numbers = #tpu.dot_dimension_numbers<[1], [0], [0], [1], [0, 0, 1, 1], [], []>} : vector<8x32xf32>, vector<32x32xf32>, vector<8x32xf32> -> vector<8x32xf32>
    %53 = vector.extract_strided_slice %2 {offsets = [1, 0], sizes = [1, 32], strides = [1, 1]} : vector<3x32xf32> to vector<1x32xf32>
    %54 = vector.broadcast %53 : vector<1x32xf32> to vector<8x32xf32>
    %55 = arith.addf %52, %54 : vector<8x32xf32>
    %56 = vector.extract_strided_slice %3 {offsets = [1, 0], sizes = [1, 32], strides = [1, 1]} : vector<3x32xf32> to vector<1x32xf32>
    %57 = vector.extract_strided_slice %4 {offsets = [1, 0], sizes = [1, 32], strides = [1, 1]} : vector<3x32xf32> to vector<1x32xf32>
    %cst_25 = arith.constant dense<0.000000e+00> : vector<8xf32>
    %58 = vector.multi_reduction <add>, %55, %cst_25 [1] : vector<8x32xf32> to vector<8xf32>
    %59 = vector.shape_cast %58 : vector<8xf32> to vector<8x1xf32>
    %cst_26 = arith.constant 3.200000e+01 : f32
    %60 = vector.broadcast %cst_26 : f32 to vector<8x1xf32>
    %61 = arith.divf %59, %60 : vector<8x1xf32>
    %62 = vector.broadcast %61 : vector<8x1xf32> to vector<8x32xf32>
    %63 = arith.subf %55, %62 : vector<8x32xf32>
    %64 = arith.mulf %63, %63 : vector<8x32xf32>
    %cst_27 = arith.constant dense<0.000000e+00> : vector<8xf32>
    %65 = vector.multi_reduction <add>, %64, %cst_27 [1] : vector<8x32xf32> to vector<8xf32>
    %66 = vector.shape_cast %65 : vector<8xf32> to vector<8x1xf32>
    %cst_28 = arith.constant 3.200000e+01 : f32
    %67 = vector.broadcast %cst_28 : f32 to vector<8x1xf32>
    %68 = arith.divf %66, %67 : vector<8x1xf32>
    %cst_29 = arith.constant 9.99999974E-6 : f32
    %69 = vector.broadcast %cst_29 : f32 to vector<8x1xf32>
    %70 = arith.addf %68, %69 : vector<8x1xf32>
    %71 = math.rsqrt %70 : vector<8x1xf32>
    %72 = vector.broadcast %71 : vector<8x1xf32> to vector<8x32xf32>
    %73 = arith.mulf %63, %72 : vector<8x32xf32>
    %74 = vector.broadcast %56 : vector<1x32xf32> to vector<8x32xf32>
    %75 = arith.mulf %73, %74 : vector<8x32xf32>
    %76 = vector.broadcast %57 : vector<1x32xf32> to vector<8x32xf32>
    %77 = arith.addf %75, %76 : vector<8x32xf32>
    %cst_30 = arith.constant 5.000000e-01 : f32
    %78 = vector.broadcast %cst_30 : f32 to vector<8x32xf32>
    %79 = arith.mulf %78, %77 : vector<8x32xf32>
    %cst_31 = arith.constant 4.471500e-02 : f32
    %80 = vector.broadcast %cst_31 : f32 to vector<8x32xf32>
    %81 = arith.mulf %80, %77 : vector<8x32xf32>
    %82 = arith.mulf %81, %77 : vector<8x32xf32>
    %83 = arith.mulf %82, %77 : vector<8x32xf32>
    %84 = arith.addf %77, %83 : vector<8x32xf32>
    %cst_32 = arith.constant 0.797884583 : f32
    %85 = vector.broadcast %cst_32 : f32 to vector<8x32xf32>
    %86 = arith.mulf %85, %84 : vector<8x32xf32>
    %87 = math.tanh %86 : vector<8x32xf32>
    %cst_33 = arith.constant 1.000000e+00 : f32
    %88 = vector.broadcast %cst_33 : f32 to vector<8x32xf32>
    %89 = arith.addf %88, %87 : vector<8x32xf32>
    %90 = arith.mulf %79, %89 : vector<8x32xf32>
    %cst_34 = arith.constant dense<0.000000e+00> : vector<32xf32>
    %91 = vector.multi_reduction <add>, %90, %cst_34 [0] : vector<8x32xf32> to vector<32xf32>
    %92 = vector.shape_cast %91 : vector<32xf32> to vector<1x32xf32>
    %cst_35 = arith.constant 8.000000e+00 : f32
    %93 = vector.broadcast %cst_35 : f32 to vector<1x32xf32>
    %94 = arith.divf %92, %93 : vector<1x32xf32>
    %c2 = arith.constant 2 : index
    %c0_36 = arith.constant 0 : index
    %c0_37 = arith.constant 0 : index
    %95 = vector.load %arg2[%c2, %c0_36, %c0_37] : memref<3x32x32xf32, #tpu.memory_space<vmem>>, vector<1x32x32xf32>
    %96 = vector.shape_cast %95 : vector<1x32x32xf32> to vector<32x32xf32>
    %cst_38 = arith.constant dense<0.000000e+00> : vector<8x32xf32>
    %97 = tpu.matmul %1, %96, %cst_38 {dimension_numbers = #tpu.dot_dimension_numbers<[1], [0], [0], [1], [0, 0, 1, 1], [], []>} : vector<8x32xf32>, vector<32x32xf32>, vector<8x32xf32> -> vector<8x32xf32>
    %98 = vector.extract_strided_slice %2 {offsets = [2, 0], sizes = [1, 32], strides = [1, 1]} : vector<3x32xf32> to vector<1x32xf32>
    %99 = vector.broadcast %98 : vector<1x32xf32> to vector<8x32xf32>
    %100 = arith.addf %97, %99 : vector<8x32xf32>
    %101 = vector.extract_strided_slice %3 {offsets = [2, 0], sizes = [1, 32], strides = [1, 1]} : vector<3x32xf32> to vector<1x32xf32>
    %102 = vector.extract_strided_slice %4 {offsets = [2, 0], sizes = [1, 32], strides = [1, 1]} : vector<3x32xf32> to vector<1x32xf32>
    %cst_39 = arith.constant dense<0.000000e+00> : vector<8xf32>
    %103 = vector.multi_reduction <add>, %100, %cst_39 [1] : vector<8x32xf32> to vector<8xf32>
    %104 = vector.shape_cast %103 : vector<8xf32> to vector<8x1xf32>
    %cst_40 = arith.constant 3.200000e+01 : f32
    %105 = vector.broadcast %cst_40 : f32 to vector<8x1xf32>
    %106 = arith.divf %104, %105 : vector<8x1xf32>
    %107 = vector.broadcast %106 : vector<8x1xf32> to vector<8x32xf32>
    %108 = arith.subf %100, %107 : vector<8x32xf32>
    %109 = arith.mulf %108, %108 : vector<8x32xf32>
    %cst_41 = arith.constant dense<0.000000e+00> : vector<8xf32>
    %110 = vector.multi_reduction <add>, %109, %cst_41 [1] : vector<8x32xf32> to vector<8xf32>
    %111 = vector.shape_cast %110 : vector<8xf32> to vector<8x1xf32>
    %cst_42 = arith.constant 3.200000e+01 : f32
    %112 = vector.broadcast %cst_42 : f32 to vector<8x1xf32>
    %113 = arith.divf %111, %112 : vector<8x1xf32>
    %cst_43 = arith.constant 9.99999974E-6 : f32
    %114 = vector.broadcast %cst_43 : f32 to vector<8x1xf32>
    %115 = arith.addf %113, %114 : vector<8x1xf32>
    %116 = math.rsqrt %115 : vector<8x1xf32>
    %117 = vector.broadcast %116 : vector<8x1xf32> to vector<8x32xf32>
    %118 = arith.mulf %108, %117 : vector<8x32xf32>
    %119 = vector.broadcast %101 : vector<1x32xf32> to vector<8x32xf32>
    %120 = arith.mulf %118, %119 : vector<8x32xf32>
    %121 = vector.broadcast %102 : vector<1x32xf32> to vector<8x32xf32>
    %122 = arith.addf %120, %121 : vector<8x32xf32>
    %cst_44 = arith.constant 5.000000e-01 : f32
    %123 = vector.broadcast %cst_44 : f32 to vector<8x32xf32>
    %124 = arith.mulf %123, %122 : vector<8x32xf32>
    %cst_45 = arith.constant 4.471500e-02 : f32
    %125 = vector.broadcast %cst_45 : f32 to vector<8x32xf32>
    %126 = arith.mulf %125, %122 : vector<8x32xf32>
    %127 = arith.mulf %126, %122 : vector<8x32xf32>
    %128 = arith.mulf %127, %122 : vector<8x32xf32>
    %129 = arith.addf %122, %128 : vector<8x32xf32>
    %cst_46 = arith.constant 0.797884583 : f32
    %130 = vector.broadcast %cst_46 : f32 to vector<8x32xf32>
    %131 = arith.mulf %130, %129 : vector<8x32xf32>
    %132 = math.tanh %131 : vector<8x32xf32>
    %cst_47 = arith.constant 1.000000e+00 : f32
    %133 = vector.broadcast %cst_47 : f32 to vector<8x32xf32>
    %134 = arith.addf %133, %132 : vector<8x32xf32>
    %135 = arith.mulf %124, %134 : vector<8x32xf32>
    %cst_48 = arith.constant dense<0.000000e+00> : vector<32xf32>
    %136 = vector.multi_reduction <add>, %135, %cst_48 [0] : vector<8x32xf32> to vector<32xf32>
    %137 = vector.shape_cast %136 : vector<32xf32> to vector<1x32xf32>
    %cst_49 = arith.constant 8.000000e+00 : f32
    %138 = vector.broadcast %cst_49 : f32 to vector<1x32xf32>
    %139 = arith.divf %137, %138 : vector<1x32xf32>
    %c0_50 = arith.constant 0 : index
    %c0_51 = arith.constant 0 : index
    %140 = vector.load %arg7[%c0_50, %c0_51] : memref<1x32xf32, #tpu.memory_space<vmem>>, vector<1x32xf32>
    %c0_52 = arith.constant 0 : index
    %c0_53 = arith.constant 0 : index
    %c0_54 = arith.constant 0 : index
    %141 = vector.load %arg6[%c0_52, %c0_53, %c0_54] : memref<3x32x32xf32, #tpu.memory_space<vmem>>, vector<1x32x32xf32>
    %142 = vector.shape_cast %141 : vector<1x32x32xf32> to vector<32x32xf32>
    %cst_55 = arith.constant dense<0.000000e+00> : vector<1x32xf32>
    %143 = tpu.matmul %49, %142, %cst_55 {dimension_numbers = #tpu.dot_dimension_numbers<[1], [0], [0], [1], [0, 0, 1, 1], [], []>} : vector<1x32xf32>, vector<32x32xf32>, vector<1x32xf32> -> vector<1x32xf32>
    %144 = arith.addf %140, %143 : vector<1x32xf32>
    %c1_56 = arith.constant 1 : index
    %c0_57 = arith.constant 0 : index
    %c0_58 = arith.constant 0 : index
    %145 = vector.load %arg6[%c1_56, %c0_57, %c0_58] : memref<3x32x32xf32, #tpu.memory_space<vmem>>, vector<1x32x32xf32>
    %146 = vector.shape_cast %145 : vector<1x32x32xf32> to vector<32x32xf32>
    %cst_59 = arith.constant dense<0.000000e+00> : vector<1x32xf32>
    %147 = tpu.matmul %94, %146, %cst_59 {dimension_numbers = #tpu.dot_dimension_numbers<[1], [0], [0], [1], [0, 0, 1, 1], [], []>} : vector<1x32xf32>, vector<32x32xf32>, vector<1x32xf32> -> vector<1x32xf32>
    %148 = arith.addf %144, %147 : vector<1x32xf32>
    %c2_60 = arith.constant 2 : index
    %c0_61 = arith.constant 0 : index
    %c0_62 = arith.constant 0 : index
    %149 = vector.load %arg6[%c2_60, %c0_61, %c0_62] : memref<3x32x32xf32, #tpu.memory_space<vmem>>, vector<1x32x32xf32>
    %150 = vector.shape_cast %149 : vector<1x32x32xf32> to vector<32x32xf32>
    %cst_63 = arith.constant dense<0.000000e+00> : vector<1x32xf32>
    %151 = tpu.matmul %139, %150, %cst_63 {dimension_numbers = #tpu.dot_dimension_numbers<[1], [0], [0], [1], [0, 0, 1, 1], [], []>} : vector<1x32xf32>, vector<32x32xf32>, vector<1x32xf32> -> vector<1x32xf32>
    %152 = arith.addf %148, %151 : vector<1x32xf32>
    %cst_64 = arith.constant 5.000000e-01 : f32
    %153 = vector.broadcast %cst_64 : f32 to vector<1x32xf32>
    %154 = arith.mulf %153, %152 : vector<1x32xf32>
    %cst_65 = arith.constant 4.471500e-02 : f32
    %155 = vector.broadcast %cst_65 : f32 to vector<1x32xf32>
    %156 = arith.mulf %155, %152 : vector<1x32xf32>
    %157 = arith.mulf %156, %152 : vector<1x32xf32>
    %158 = arith.mulf %157, %152 : vector<1x32xf32>
    %159 = arith.addf %152, %158 : vector<1x32xf32>
    %cst_66 = arith.constant 0.797884583 : f32
    %160 = vector.broadcast %cst_66 : f32 to vector<1x32xf32>
    %161 = arith.mulf %160, %159 : vector<1x32xf32>
    %162 = math.tanh %161 : vector<1x32xf32>
    %cst_67 = arith.constant 1.000000e+00 : f32
    %163 = vector.broadcast %cst_67 : f32 to vector<1x32xf32>
    %164 = arith.addf %163, %162 : vector<1x32xf32>
    %165 = arith.mulf %154, %164 : vector<1x32xf32>
    %c0_68 = arith.constant 0 : index
    %c0_69 = arith.constant 0 : index
    %166 = vector.load %arg8[%c0_68, %c0_69] : memref<32x3xf32, #tpu.memory_space<vmem>>, vector<32x3xf32>
    %cst_70 = arith.constant dense<0.000000e+00> : vector<1x3xf32>
    %167 = tpu.matmul %165, %166, %cst_70 {dimension_numbers = #tpu.dot_dimension_numbers<[1], [0], [0], [1], [0, 0, 1, 1], [], []>} : vector<1x32xf32>, vector<32x3xf32>, vector<1x3xf32> -> vector<1x3xf32>
    %c0_71 = arith.constant 0 : index
    %c0_72 = arith.constant 0 : index
    %168 = vector.load %arg9[%c0_71, %c0_72] : memref<1x3xf32, #tpu.memory_space<vmem>>, vector<1x3xf32>
    %169 = arith.addf %167, %168 : vector<1x3xf32>
    %cst_73 = arith.constant dense<0xFF800000> : vector<1xf32>
    %170 = vector.multi_reduction <maximumf>, %169, %cst_73 [1] : vector<1x3xf32> to vector<1xf32>
    %171 = vector.shape_cast %170 : vector<1xf32> to vector<1x1xf32>
    %172 = vector.broadcast %171 : vector<1x1xf32> to vector<1x3xf32>
    %173 = arith.subf %169, %172 : vector<1x3xf32>
    %174 = math.exp %173 : vector<1x3xf32>
    %cst_74 = arith.constant dense<0.000000e+00> : vector<1xf32>
    %175 = vector.multi_reduction <add>, %174, %cst_74 [1] : vector<1x3xf32> to vector<1xf32>
    %176 = vector.shape_cast %175 : vector<1xf32> to vector<1x1xf32>
    %177 = vector.broadcast %176 : vector<1x1xf32> to vector<1x3xf32>
    %178 = arith.divf %174, %177 : vector<1x3xf32>
    %179 = vector.extract_strided_slice %178 {offsets = [0, 0], sizes = [1, 1], strides = [1, 1]} : vector<1x3xf32> to vector<1x1xf32>
    %180 = vector.broadcast %179 : vector<1x1xf32> to vector<8x32xf32>
    %181 = arith.mulf %180, %45 : vector<8x32xf32>
    %182 = vector.extract_strided_slice %178 {offsets = [0, 1], sizes = [1, 1], strides = [1, 1]} : vector<1x3xf32> to vector<1x1xf32>
    %183 = vector.broadcast %182 : vector<1x1xf32> to vector<8x32xf32>
    %184 = arith.mulf %183, %90 : vector<8x32xf32>
    %185 = arith.addf %181, %184 : vector<8x32xf32>
    %186 = vector.extract_strided_slice %178 {offsets = [0, 2], sizes = [1, 1], strides = [1, 1]} : vector<1x3xf32> to vector<1x1xf32>
    %187 = vector.broadcast %186 : vector<1x1xf32> to vector<8x32xf32>
    %188 = arith.mulf %187, %135 : vector<8x32xf32>
    %189 = arith.addf %185, %188 : vector<8x32xf32>
    %c0_75 = arith.constant 0 : index
    %c0_76 = arith.constant 0 : index
    %190 = vector.load %arg10[%c0_75, %c0_76] : memref<32x64xf32, #tpu.memory_space<vmem>>, vector<32x64xf32>
    %cst_77 = arith.constant dense<0.000000e+00> : vector<8x64xf32>
    %191 = tpu.matmul %189, %190, %cst_77 {dimension_numbers = #tpu.dot_dimension_numbers<[1], [0], [0], [1], [0, 0, 1, 1], [], []>} : vector<8x32xf32>, vector<32x64xf32>, vector<8x64xf32> -> vector<8x64xf32>
    %c0_78 = arith.constant 0 : index
    %c0_79 = arith.constant 0 : index
    %192 = vector.load %arg11[%c0_78, %c0_79] : memref<1x64xf32, #tpu.memory_space<vmem>>, vector<1x64xf32>
    %193 = vector.broadcast %192 : vector<1x64xf32> to vector<8x64xf32>
    %194 = arith.addf %191, %193 : vector<8x64xf32>
    %c0_80 = arith.constant 0 : index
    %c0_81 = arith.constant 0 : index
    %195 = vector.load %arg12[%c0_80, %c0_81] : memref<1x64xf32, #tpu.memory_space<vmem>>, vector<1x64xf32>
    %c0_82 = arith.constant 0 : index
    %c0_83 = arith.constant 0 : index
    %196 = vector.load %arg13[%c0_82, %c0_83] : memref<1x64xf32, #tpu.memory_space<vmem>>, vector<1x64xf32>
    %cst_84 = arith.constant dense<0.000000e+00> : vector<8xf32>
    %197 = vector.multi_reduction <add>, %194, %cst_84 [1] : vector<8x64xf32> to vector<8xf32>
    %198 = vector.shape_cast %197 : vector<8xf32> to vector<8x1xf32>
    %cst_85 = arith.constant 6.400000e+01 : f32
    %199 = vector.broadcast %cst_85 : f32 to vector<8x1xf32>
    %200 = arith.divf %198, %199 : vector<8x1xf32>
    %201 = vector.broadcast %200 : vector<8x1xf32> to vector<8x64xf32>
    %202 = arith.subf %194, %201 : vector<8x64xf32>
    %203 = arith.mulf %202, %202 : vector<8x64xf32>
    %cst_86 = arith.constant dense<0.000000e+00> : vector<8xf32>
    %204 = vector.multi_reduction <add>, %203, %cst_86 [1] : vector<8x64xf32> to vector<8xf32>
    %205 = vector.shape_cast %204 : vector<8xf32> to vector<8x1xf32>
    %cst_87 = arith.constant 6.400000e+01 : f32
    %206 = vector.broadcast %cst_87 : f32 to vector<8x1xf32>
    %207 = arith.divf %205, %206 : vector<8x1xf32>
    %cst_88 = arith.constant 9.99999974E-6 : f32
    %208 = vector.broadcast %cst_88 : f32 to vector<8x1xf32>
    %209 = arith.addf %207, %208 : vector<8x1xf32>
    %210 = math.rsqrt %209 : vector<8x1xf32>
    %211 = vector.broadcast %210 : vector<8x1xf32> to vector<8x64xf32>
    %212 = arith.mulf %202, %211 : vector<8x64xf32>
    %213 = vector.broadcast %195 : vector<1x64xf32> to vector<8x64xf32>
    %214 = arith.mulf %212, %213 : vector<8x64xf32>
    %215 = vector.broadcast %196 : vector<1x64xf32> to vector<8x64xf32>
    %216 = arith.addf %214, %215 : vector<8x64xf32>
    %cst_89 = arith.constant 5.000000e-01 : f32
    %217 = vector.broadcast %cst_89 : f32 to vector<8x64xf32>
    %218 = arith.mulf %217, %216 : vector<8x64xf32>
    %cst_90 = arith.constant 4.471500e-02 : f32
    %219 = vector.broadcast %cst_90 : f32 to vector<8x64xf32>
    %220 = arith.mulf %219, %216 : vector<8x64xf32>
    %221 = arith.mulf %220, %216 : vector<8x64xf32>
    %222 = arith.mulf %221, %216 : vector<8x64xf32>
    %223 = arith.addf %216, %222 : vector<8x64xf32>
    %cst_91 = arith.constant 0.797884583 : f32
    %224 = vector.broadcast %cst_91 : f32 to vector<8x64xf32>
    %225 = arith.mulf %224, %223 : vector<8x64xf32>
    %226 = math.tanh %225 : vector<8x64xf32>
    %cst_92 = arith.constant 1.000000e+00 : f32
    %227 = vector.broadcast %cst_92 : f32 to vector<8x64xf32>
    %228 = arith.addf %227, %226 : vector<8x64xf32>
    %229 = arith.mulf %218, %228 : vector<8x64xf32>
    %c0_93 = arith.constant 0 : index
    %c0_94 = arith.constant 0 : index
    %230 = vector.load %arg14[%c0_93, %c0_94] : memref<64x32xf32, #tpu.memory_space<vmem>>, vector<64x32xf32>
    %cst_95 = arith.constant dense<0.000000e+00> : vector<8x32xf32>
    %231 = tpu.matmul %229, %230, %cst_95 {dimension_numbers = #tpu.dot_dimension_numbers<[1], [0], [0], [1], [0, 0, 1, 1], [], []>} : vector<8x64xf32>, vector<64x32xf32>, vector<8x32xf32> -> vector<8x32xf32>
    %c0_96 = arith.constant 0 : index
    %c0_97 = arith.constant 0 : index
    %232 = vector.load %arg15[%c0_96, %c0_97] : memref<1x32xf32, #tpu.memory_space<vmem>>, vector<1x32xf32>
    %233 = vector.broadcast %232 : vector<1x32xf32> to vector<8x32xf32>
    %234 = arith.addf %231, %233 : vector<8x32xf32>
    %c0_98 = arith.constant 0 : index
    %c0_99 = arith.constant 0 : index
    %235 = vector.load %arg16[%c0_98, %c0_99] : memref<1x32xf32, #tpu.memory_space<vmem>>, vector<1x32xf32>
    %c0_100 = arith.constant 0 : index
    %c0_101 = arith.constant 0 : index
    %236 = vector.load %arg17[%c0_100, %c0_101] : memref<1x32xf32, #tpu.memory_space<vmem>>, vector<1x32xf32>
    %cst_102 = arith.constant dense<0.000000e+00> : vector<8xf32>
    %237 = vector.multi_reduction <add>, %234, %cst_102 [1] : vector<8x32xf32> to vector<8xf32>
    %238 = vector.shape_cast %237 : vector<8xf32> to vector<8x1xf32>
    %cst_103 = arith.constant 3.200000e+01 : f32
    %239 = vector.broadcast %cst_103 : f32 to vector<8x1xf32>
    %240 = arith.divf %238, %239 : vector<8x1xf32>
    %241 = vector.broadcast %240 : vector<8x1xf32> to vector<8x32xf32>
    %242 = arith.subf %234, %241 : vector<8x32xf32>
    %243 = arith.mulf %242, %242 : vector<8x32xf32>
    %cst_104 = arith.constant dense<0.000000e+00> : vector<8xf32>
    %244 = vector.multi_reduction <add>, %243, %cst_104 [1] : vector<8x32xf32> to vector<8xf32>
    %245 = vector.shape_cast %244 : vector<8xf32> to vector<8x1xf32>
    %cst_105 = arith.constant 3.200000e+01 : f32
    %246 = vector.broadcast %cst_105 : f32 to vector<8x1xf32>
    %247 = arith.divf %245, %246 : vector<8x1xf32>
    %cst_106 = arith.constant 9.99999974E-6 : f32
    %248 = vector.broadcast %cst_106 : f32 to vector<8x1xf32>
    %249 = arith.addf %247, %248 : vector<8x1xf32>
    %250 = math.rsqrt %249 : vector<8x1xf32>
    %251 = vector.broadcast %250 : vector<8x1xf32> to vector<8x32xf32>
    %252 = arith.mulf %242, %251 : vector<8x32xf32>
    %253 = vector.broadcast %235 : vector<1x32xf32> to vector<8x32xf32>
    %254 = arith.mulf %252, %253 : vector<8x32xf32>
    %255 = vector.broadcast %236 : vector<1x32xf32> to vector<8x32xf32>
    %256 = arith.addf %254, %255 : vector<8x32xf32>
    %257 = arith.addf %256, %1 : vector<8x32xf32>
    %c0_107 = arith.constant 0 : index
    %c0_108 = arith.constant 0 : index
    %c0_109 = arith.constant 0 : index
    %258 = vector.load %arg18[%c0_107, %c0_108, %c0_109] : memref<1x8x32xf32, #tpu.memory_space<vmem>>, vector<1x8x32xf32>
    %259 = vector.shape_cast %258 : vector<1x8x32xf32> to vector<8x32xf32>
    %260 = vector.shape_cast %257 : vector<8x32xf32> to vector<1x8x32xf32>
    tpu.vector_store %arg18[%c0_107, %c0_108, %c0_109], %260 {strides = array<i32>} : memref<1x8x32xf32, #tpu.memory_space<vmem>>, vector<1x8x32xf32>,
    return
  }
  func.func @transform_0(%arg0: i32) -> (i32, i32, i32) {
    %c0_i32 = arith.constant 0 : i32
    %c0_i32_0 = arith.constant 0 : i32
    %c0_i32_1 = arith.constant 0 : i32
    return %arg0, %c0_i32, %c0_i32_0 : i32, i32, i32
  }
  func.func @transform_1(%arg0: i32) -> (i32, i32, i32) {
    %c0_i32 = arith.constant 0 : i32
    %c0_i32_0 = arith.constant 0 : i32
    %c0_i32_1 = arith.constant 0 : i32
    %c0_i32_2 = arith.constant 0 : i32
    return %c0_i32, %c0_i32_0, %c0_i32_1 : i32, i32, i32
  }
  func.func @transform_2(%arg0: i32) -> (i32, i32) {
    %c0_i32 = arith.constant 0 : i32
    %c0_i32_0 = arith.constant 0 : i32
    %c0_i32_1 = arith.constant 0 : i32
    return %c0_i32, %c0_i32_0 : i32, i32
  }
  func.func @transform_3(%arg0: i32) -> (i32, i32) {
    %c0_i32 = arith.constant 0 : i32
    %c0_i32_0 = arith.constant 0 : i32
    %c0_i32_1 = arith.constant 0 : i32
    return %c0_i32, %c0_i32_0 : i32, i32
  }
  func.func @transform_4(%arg0: i32) -> (i32, i32) {
    %c0_i32 = arith.constant 0 : i32
    %c0_i32_0 = arith.constant 0 : i32
    %c0_i32_1 = arith.constant 0 : i32
    return %c0_i32, %c0_i32_0 : i32, i32
  }
  func.func @transform_5(%arg0: i32) -> (i32, i32, i32) {
    %c0_i32 = arith.constant 0 : i32
    %c0_i32_0 = arith.constant 0 : i32
    %c0_i32_1 = arith.constant 0 : i32
    %c0_i32_2 = arith.constant 0 : i32
    return %c0_i32, %c0_i32_0, %c0_i32_1 : i32, i32, i32
  }
  func.func @transform_6(%arg0: i32) -> (i32, i32) {
    %c0_i32 = arith.constant 0 : i32
    %c0_i32_0 = arith.constant 0 : i32
    %c0_i32_1 = arith.constant 0 : i32
    return %c0_i32, %c0_i32_0 : i32, i32
  }
  func.func @transform_7(%arg0: i32) -> (i32, i32) {
    %c0_i32 = arith.constant 0 : i32
    %c0_i32_0 = arith.constant 0 : i32
    %c0_i32_1 = arith.constant 0 : i32
    return %c0_i32, %c0_i32_0 : i32, i32
  }
  func.func @transform_8(%arg0: i32) -> (i32, i32) {
    %c0_i32 = arith.constant 0 : i32
    %c0_i32_0 = arith.constant 0 : i32
    %c0_i32_1 = arith.constant 0 : i32
    return %c0_i32, %c0_i32_0 : i32, i32
  }
  func.func @transform_9(%arg0: i32) -> (i32, i32) {
    %c0_i32 = arith.constant 0 : i32
    %c0_i32_0 = arith.constant 0 : i32
    %c0_i32_1 = arith.constant 0 : i32
    return %c0_i32, %c0_i32_0 : i32, i32
  }
  func.func @transform_10(%arg0: i32) -> (i32, i32) {
    %c0_i32 = arith.constant 0 : i32
    %c0_i32_0 = arith.constant 0 : i32
    %c0_i32_1 = arith.constant 0 : i32
    return %c0_i32, %c0_i32_0 : i32, i32
  }
  func.func @transform_11(%arg0: i32) -> (i32, i32) {
    %c0_i32 = arith.constant 0 : i32
    %c0_i32_0 = arith.constant 0 : i32
    %c0_i32_1 = arith.constant 0 : i32
    return %c0_i32, %c0_i32_0 : i32, i32
  }
  func.func @transform_12(%arg0: i32) -> (i32, i32) {
    %c0_i32 = arith.constant 0 : i32
    %c0_i32_0 = arith.constant 0 : i32
    %c0_i32_1 = arith.constant 0 : i32
    return %c0_i32, %c0_i32_0 : i32, i32
  }
  func.func @transform_13(%arg0: i32) -> (i32, i32) {
    %c0_i32 = arith.constant 0 : i32
    %c0_i32_0 = arith.constant 0 : i32
    %c0_i32_1 = arith.constant 0 : i32
    return %c0_i32, %c0_i32_0 : i32, i32
  }
  func.func @transform_14(%arg0: i32) -> (i32, i32) {
    %c0_i32 = arith.constant 0 : i32
    %c0_i32_0 = arith.constant 0 : i32
    %c0_i32_1 = arith.constant 0 : i32
    return %c0_i32, %c0_i32_0 : i32, i32
  }
  func.func @transform_15(%arg0: i32) -> (i32, i32) {
    %c0_i32 = arith.constant 0 : i32
    %c0_i32_0 = arith.constant 0 : i32
    %c0_i32_1 = arith.constant 0 : i32
    return %c0_i32, %c0_i32_0 : i32, i32
  }
  func.func @transform_16(%arg0: i32) -> (i32, i32) {
    %c0_i32 = arith.constant 0 : i32
    %c0_i32_0 = arith.constant 0 : i32
    %c0_i32_1 = arith.constant 0 : i32
    return %c0_i32, %c0_i32_0 : i32, i32
  }
  func.func @transform_17(%arg0: i32) -> (i32, i32, i32) {
    %c0_i32 = arith.constant 0 : i32
    %c0_i32_0 = arith.constant 0 : i32
    %c0_i32_1 = arith.constant 0 : i32
    return %arg0, %c0_i32, %c0_i32_0 : i32, i32, i32
  }
}

</mosaic_0001>

<bundles_post_ra>
// kernel: pattern_matcher_forward.1
= control target key start
LH: loop header
LB: loop body
LE: loop exit
PB: predicated region body
PF: predicated region fallthrough
CT: control target
= control target key end

     0   :  { %s2492_s0 = inlined_call_operand.vmem [shape: f32[2,8,32], index: 0, kind: input, shape index: {}]   ;;  %s2493_s1 = inlined_call_operand.vmem [shape: f32[3,32,32], index: 1, kind: input, shape index: {}]   ;;  %s2494_s2 = inlined_call_operand.vmem [shape: f32[3,32], index: 2, kind: input, shape index: {}]   ;;  %s2495_s3 = inlined_call_operand.vmem [shape: f32[3,32], index: 3, kind: input, shape index: {}]   ;;  %s2496_s4 = inlined_call_operand.vmem [shape: f32[3,32], index: 4, kind: input, shape index: {}]   ;;  %s2497_s5 = inlined_call_operand.hbm [shape: f32[3,32,32], index: 5, kind: input, shape index: {}]   ;;  %s2498_s6 = inlined_call_operand.vmem [shape: f32[1,32], index: 6, kind: input, shape index: {}]   ;;  %s2499_s7 = inlined_call_operand.vmem [shape: f32[32,3], index: 7, kind: input, shape index: {}]   ;;  %s2500_s8 = inlined_call_operand.vmem [shape: f32[1,3], index: 8, kind: input, shape index: {}]   ;;  %s2501_s9 = inlined_call_operand.vmem [shape: f32[32,64], index: 9, kind: input, shape index: {}]   ;;  %s2502_s10 = inlined_call_operand.vmem [shape: f32[1,64], index: 10, kind: input, shape index: {}]   ;;  %s2503_s11 = inlined_call_operand.vmem [shape: f32[1,64], index: 11, kind: input, shape index: {}]   ;;  %s2504_s12 = inlined_call_operand.vmem [shape: f32[1,64], index: 12, kind: input, shape index: {}]   ;;  %s2505_s13 = inlined_call_operand.vmem [shape: f32[64,32], index: 13, kind: input, shape index: {}]   ;;  %s2506_s14 = inlined_call_operand.vmem [shape: f32[1,32], index: 14, kind: input, shape index: {}]   ;;  %s2507_s15 = inlined_call_operand.vmem [shape: f32[1,32], index: 15, kind: input, shape index: {}]   ;;  %s2508_s16 = inlined_call_operand.vmem [shape: f32[1,32], index: 16, kind: input, shape index: {}]   ;;  %s2509_s17 = inlined_call_operand.hbm [shape: f32[2,8,32], index: 17, kind: output, shape index: {}]  }
   0x1   :  { %2520 = sst [smem:[#allocation14_spill]] %s2492_s0 }
   0x2   :  { %2521 = sst [smem:[#allocation15_spill]] %s2493_s1 }
   0x3   :  { %2522 = sst [smem:[#allocation16_spill]] %s2497_s5 }
   0x4   :  { %22 = vsyncpa [#allocation3], 0 }
   0x5   :  { %23 = vsyncpa [#allocation4], 0 }
   0x6   :  { %25 = vsyncpa [#allocation4 + $0x1], 0  ;;  %s2146_s24 = smov 0   ;;  %s2148_s25 = smov 0  }
   0x7   :  { %s2150_s26 = smov 0   ;;  %s2152_s27 = smov 0  }
   0x8 LB: > { %2523 = sst [smem:[#allocation8_spill]] %s2033_s24  ;;  %s2167_s28 = sadd.s32 4294967295, %s2045_s27   ;;  %s2045_s27 = sphi %s2152_s27, %s2544_s27   ;;  %s2041_s26 = sphi %s2150_s26, %s2546_s26   ;;  %s2037_s25 = sphi %s2148_s25, %s2548_s25   ;;  %s2033_s24 = sphi %s2146_s24, %s2547_s24  }
   0x9   : > { %2524 = sst [smem:[#allocation9_spill]] %s2041_s26  ;;  %s1608_s29 = sadd.s32 4294967294, %s2045_s27  }
   0xa   : > { %2525 = sst [smem:[#allocation10_spill]] %s2045_s27  ;;  %s2171_s0 = sadd.s32 1, %s2045_s27  }
   0xb   : > { %2526 = sst [smem:[#allocation11_spill]] %s2171_s0  ;;  %s400_s30 = sadd.s32 1, %s2041_s26 }
   0xc   : > { %s397_s18 = ssub.s32 %s2045_s27, %s2171_s0  ;;  %p410_p0 = scmp.ne.s32.totalorder %s2041_s26, %s2037_s25 }
   0xd   : > { %p398_p1 = scmp.eq.s32.totalorder %s397_s18, 0  ;;  %p411_p2 = scmp.eq.s32.totalorder %s2167_s28, 1 }
   0xe   : > { %p416_p3 = scmp.ne.s32.totalorder %s2037_s25, %s2033_s24  ;;  %p417_p4 = scmp.eq.s32.totalorder %s1608_s29, 1 }
   0xf   : > { %s2182_s19 = scalar_select %p398_p1, %s2041_s26, %s400_s30  }
  0x10   : > { %p2184_p5 = por %p411_p2, %p410_p0  ;;  %p2188_p6 = por %p417_p4, %p416_p3 }
  0x11   : > { %2527 = sst [smem:[#allocation12_spill]] %s2182_s19  ;;  %p1609_p7 = scmp.ge.s32.totalorder %s2045_s27, 1 }
  0x12   : > { %s2528_s1 = scalar_select %p2184_p5, 1, 0 }
  0x13   : > { %s2529_s20 = scalar_select %p2188_p6, 1, 0 }
  0x14   : > { %p424_p8 = scmp.lt.s32.totalorder %s2045_s27, 3  ;;  %p2516_p9 = scmp.eq.s32.totalorder %s2167_s28, 0 }
  0x15   : > { %2530 = sst [smem:[#allocation13_spill]] %s2529_s20  ;;  %s2047_s22 = smov [#allocation2]  }
  0x16   : > { %p2195_p10 = pnand %p1609_p7, %p424_p8  ;;  %s448_s23 = sshll.u32 %s2047_s22, 4  ;;  %s449_s23 = int_to_ptr.vmem [resolvable:$true] %s448_s23 }
  0x17   : > { %s2533_s5 = sld [smem:[#allocation16_spill]] }
  0x18   : > { %s2531_s21 = scalar_select %p2195_p10, 1, 0 }
  0x19   : > { %p1876_p11 = pneg %p2195_p10 }
  0x1b   : > { %p2203_p12 = pnand %p2516_p9, %p1876_p11 }
  0x1d   : > { %s1951_s19 = scalar_lea.hbm %s2533_s5, 1536  ;;  %p1953_p0 = pneg %p2203_p12 }
  0x1e   : > { %p1952_p13 = scmp.ne.s32.totalorder %s2533_s5, %s1951_s19  ;;  %p1958_p3 = scmp.lt.u32.totalorder %s1951_s19, %s2533_s5 }
  0x20   : > { %p1954_p1 = pnand %p1953_p0, %p1952_p13 }
  0x22   : > { %p1955_p2 = pneg %p1954_p1 }
  0x24   : > { %p1960_p4 = pnand %p1958_p3, %p1955_p2 }
  0x26   : > { %1963 = shalt.err (!%p1960_p4)
}
  0x27   : > { %s1964_s24 = scalar_lea.vmem %s449_s23, 1536  ;;  %p1972_p9 = scmp.lt.s32.totalorder %s449_s23, %s449_s23 }
  0x28   : > { %p1965_p7 = scmp.ne.s32.totalorder %s449_s23, %s1964_s24  ;;  %p1973_p6 = scmp.lt.s32.totalorder %s1964_s24, %s1964_s24 }
  0x2a   : > { %p1967_p8 = pnand %p1965_p7, %p1953_p0  ;;  %p1974_p5 = por %p1973_p6, %p1972_p9 }
  0x2c   : > { %p1968_p11 = pneg %p1967_p8 }
  0x2e   : > { %p1975_p10 = pnand %p1974_p5, %p1968_p11 }
  0x30   : > { %1978 = shalt.err (!%p1975_p10)
}
  0x31   : > { %s2048_s26 = smov 128   ;;  %s2049_s0 = smov 8  }
  0x32   : > { %1879 = dma.hbm_to_vmem [thread:$0]  (!%p2203_p12), %s2533_s5, 1536, %s449_s23, [#allocation3], %s2048_s26, %s2048_s26, %s2049_s0  }
  0x33   : > { %p2534_p13 = scmp.ne.s32.totalorder %s2531_s21, 0 }
  0x34   : > { %p2535_p1 = scmp.eq.s32.totalorder (!%p2534_p13), %s2167_s28, 0 }
  0x35   : > { %504 = sbr.rel (%p2534_p13) target bundleno = 2694 (0xa86), region = 88 }
  0x3c   : > { %2024 = dma.done.wait (%p2535_p1), [#allocation3], 1536   ;;  %p2536_p0 = pmov %p2535_p1 }
  0x3d   : > { %p555_p5 = scmp.lt.s32.totalorder %s2167_s28, 1  ;;  %v2050_v0 = vmov 0.0|0.0   ;;  %vm2051_vm0 = vmmov 0   ;;  %v2052_v1 = vmov 0.0   ;;  %s2537_s21 = sld [smem:[#allocation15_spill]]  ;;  %vm571_vm1 = vcmask 261120  }
  0x3e   : > { %2026 = vsyncadd (%p2536_p0), [#allocation3], 4294965760  ;;  %1799 = vmatprep.subr.bf16.mxu1 %v2050_v0  ;;  %1811 = vmatprep.subr.bf16.mxu0 %v2050_v0  ;;  %s2538_s27 = sld [smem:[#allocation14_spill]]  ;;  %v567_v21 = vlaneseq  ;;  %v560_v24 = vld [vmem:[%s2494_s2] sm:$0x7]  ;;  %v927_v58 = vld [vmem:[#allocation2 + $0x8] sm:$0xff] }
  0x3f   : > { %1700 = vmatprep.mubr.msk.f32.mxu1 %vm2051_vm0, %v2052_v1  ;;  %1722 = vmatprep.mubr.msk.f32.mxu0 %vm2051_vm0, %v2052_v1  ;;  %s556_s24 = scalar_select %p555_p5, %s2167_s28, 1  ;;  %v926_v57 = vld [vmem:[#allocation2] sm:$0xff]  ;;  %v928_v59 = vld [vmem:[#allocation2 + $0x10] sm:$0xff]  ;;  %v929_v61 = vld [vmem:[#allocation2 + $0x18] sm:$0xff]  ;;  %vm1249_vm2 = vcmask 16384   ;;  %vm1366_vm3 = vcmask 523264  }
  0x40   : > { %v568_v22 = vshrl.u32 %v567_v21, 7  ;;  %v1818_v60 = vpack.c.bf16 %v927_v58, %v926_v57  ;;  %v1821_v62 = vpack.c.bf16 %v929_v61, %v928_v59  ;;  %s2053_s19 = smov 126   ;;  %s2054_s23 = smov 127  }
  0x41   : > { %s1615_s20 = sshll.u32 %s556_s24, 3  ;;  %s1640_s0 = sshll.u32 %s2167_s28, 7 }
  0x42   : > { %v2296_v23 = vsub.s32 0, %v568_v22  ;;  %v2301_v25 = vsub.s32 2, %v568_v22  ;;  %v2305_v32 = vsub.s32 1, %v568_v22  ;;  %p2539_p9 = scmp.ne.s32.totalorder %s2528_s1, 0  ;;  %s2055_s28 = smov [#allocation5]  }
  0x43   : > { %v563_v2 = vld [vmem:[%s2537_s21] sm:$0xff]  ;;  %v564_v3 = vld [vmem:[%s2537_s21 + $0x8] sm:$0xff]  ;;  %v565_v7 = vld [vmem:[%s2537_s21 + $0x10] sm:$0xff] }
  0x44   : > { %v1622_v4 = vld [vmem:[%s2537_s21 + $0x40] sm:$0xff]  ;;  %v1800_v5 = vpack.c.bf16 %v564_v3, %v563_v2  ;;  %v1623_v6 = vld [vmem:[%s2537_s21 + $0x48] sm:$0xff]  ;;  %v566_v8 = vld [vmem:[%s2537_s21 + $0x18] sm:$0xff]  ;;  %s558_s30 = scalar_lea.vmem %s2538_s27, %s1615_s20  ;;  %v570_v26 = vrot.slane %v560_v24, %v2296_v23  ;;  %v814_v27 = vrot.slane %v560_v24, %v2301_v25  ;;  %v695_v37 = vrot.slane %v560_v24, %v2305_v32 }
  0x45   : > { %v1812_v9 = vpack.c.bf16 %v1623_v6, %v1622_v4  ;;  %v1624_v10 = vld [vmem:[%s2537_s21 + $0x50] sm:$0xff]  ;;  %v1625_v11 = vld [vmem:[%s2537_s21 + $0x58] sm:$0xff]  ;;  %v1803_v12 = vpack.c.bf16 %v566_v8, %v565_v7  ;;  %v1617_v14 = vld [vmem:[%s2537_s21 + $0x20] sm:$0xff] }
  0x46   : > { %1801 = vmatpush3.bf16.msra.mxu1 %v1800_v5  ;;  %v1815_v13 = vpack.c.bf16 %v1625_v11, %v1624_v10  ;;  %v1618_v15 = vld [vmem:[%s2537_s21 + $0x28] sm:$0xff]  ;;  %v2272_v16 = vld [vmem:[%s558_s30] sm:$0xff]  ;;  %v1619_v18 = vld [vmem:[%s2537_s21 + $0x30] sm:$0xff] }
  0x47   : > { %1813 = vmatpush3.bf16.msra.mxu0 %v1812_v9  ;;  %1802 = vmatprep.subr.bf16.mxu1 %v2050_v0  ;;  %v1806_v17 = vpack.c.bf16 %v1618_v15, %v1617_v14  ;;  %v1620_v19 = vld [vmem:[%s2537_s21 + $0x38] sm:$0xff]  ;;  %v561_v9 = vld [vmem:[%s2495_s3] sm:$0x7] }
  0x48   : > { %1814 = vmatprep.subr.bf16.mxu0 %v2050_v0  ;;  %v1809_v20 = vpack.c.bf16 %v1620_v19, %v1619_v18  ;;  %v562_v11 = vld [vmem:[%s2496_s4] sm:$0x7]  ;;  %v782_v24 = vrot.slane %v561_v9, %v2305_v32 }
  0x49   : > { %v667_v14 = vrot.slane %v562_v11, %v2296_v23 }
  0x4a   : > { %1804 = vmatpush3.bf16.msra.mxu1 %v1803_v12  ;;  %v662_v12 = vrot.slane %v561_v9, %v2296_v23 }
  0x4b   : > { %1816 = vmatpush3.bf16.msra.mxu0 %v1815_v13  ;;  %1805 = vmatprep.subr.bf16.mxu1 %v2050_v0 }
  0x4c   : > { %1835 = vmatprep.subr.bf16.mxu0 %v2050_v0 }
  0x4d   : > { %1701 = vmatmul.mubr.msk.f32.vlgmr.msra.gmra.mrb[0].mxu1 %vm571_vm1, %v2272_v16 }
  0x4e   : > { %1723 = vmatmul.mubr.msk.f32.vlgmr.msra.gmra.mrb[0].mxu0 %vm571_vm1, %v2272_v16  ;;  %1807 = vmatpush3.bf16.msra.mxu1 %v1806_v17  ;;  %v901_v17 = vrot.slane %v561_v9, %v2301_v25 }
  0x4f   : > { %1808 = vmatprep.subr.bf16.mxu1 %v2050_v0  ;;  %1711 = vmatprep.mubr.msk.f32.mxu1 %vm2051_vm0, %v2052_v1 }
  0x50   : > { %1766 = vmatprep.mubr.msk.f32.mxu0 %vm2051_vm0, %v2052_v1 }
  0x52   : > { %1810 = vmatpush3.bf16.msra.mxu1 %v1809_v20  ;;  %v906_v20 = vrot.slane %v562_v11, %v2301_v25 }
  0x53   : > { %1817 = vmatprep.subr.bf16.mxu1 %v2050_v0 }
  0x55   : > { %1712 = vmatmul.mubr.msk.f32.vlgmr.msra.gmra.mrb[2].mxu1 %vm571_vm1, %v2272_v16 }
  0x56   : > { %1733 = vmatprep.mubr.msk.f32.mxu1 %vm2051_vm0, %v2052_v1  ;;  %1819 = vmatpush3.bf16.msra.mxu1 %v1818_v60 }
  0x57   : > { %1820 = vmatprep.subr.bf16.mxu1 %v2050_v0 }
  0x5a   : > { %1822 = vmatpush3.bf16.msra.mxu1 %v1821_v62 }
  0x5b   : > { %1823 = vmatprep.subr.bf16.mxu1 %v2050_v0 }
 0x120   : > { %v641_v28 = vpop.f32.mrb[0].mxu1 }
 0x121   : > { %v642_v29 = vadd.f32 %v641_v28, %v570_v26  ;;  %v881_v30 = vpop.f32.mrb[0].mxu0  ;;  %v1702_v31 = vpop.f32.mrb[1].mxu1 }
 0x122   : > { %v882_v33 = vadd.f32 %v881_v30, %v814_v27  ;;  %v1724_v34 = vpop.f32.mrb[1].mxu0 }
 0x123   : > { %v645_v35 = vsel %vm571_vm1, %v642_v29, 0.0 }
 0x124   : > { %v885_v36 = vsel %vm571_vm1, %v882_v33, 0.0  ;;  %646 = vadd.xlane.f32.xlu0 %v645_v35 }
 0x125   : > { %886 = vadd.xlane.f32.xlu1 %v885_v36 }
 0x128   : > { %v762_v38 = vpop.f32.mrb[2].mxu1 }
 0x129   : > { %v763_v39 = vadd.f32 %v762_v38, %v695_v37  ;;  %v1713_v40 = vpop.f32.mrb[3].mxu1 }
 0x12b   : > { %v766_v41 = vsel %vm571_vm1, %v763_v39, 0.0 }
 0x12c   : > { %767 = vadd.xlane.f32.xlu0 %v766_v41 }
 0x1b1   : > { %v647_v42 = vpop.xlane.xlu0 %646 }
 0x1b2   : > { %v887_v43 = vpop.xlane.xlu1 %886  ;;  %v649_v44 = vmul.f32 0.03125, %v647_v42 }
 0x1b3   : > { %v888_v45 = vmul.f32 0.03125, %v887_v43 }
 0x1b4   : > { %v650_v46 = vsub.f32 %v642_v29, %v649_v44  ;;  %v787_v29 = vrot.slane %v562_v11, %v2305_v32 }
 0x1b5   : > { %v889_v47 = vsub.f32 %v882_v33, %v888_v45 }
 0x1b6   : > { %v651_v48 = vmul.f32 %v650_v46, %v650_v46 }
 0x1b7   : > { %v890_v50 = vmul.f32 %v889_v47, %v889_v47 }
 0x1b8   : > { %v652_v49 = vsel %vm571_vm1, %v651_v48, 0.0 }
 0x1b9   : > { %653 = vadd.xlane.f32.xlu1 %v652_v49  ;;  %v768_v51 = vpop.xlane.xlu0 %767  ;;  %v891_v54 = vsel %vm571_vm1, %v890_v50, 0.0 }
 0x1ba   : > { %v769_v52 = vmul.f32 0.03125, %v768_v51 }
 0x1bc   : > { %v770_v53 = vsub.f32 %v763_v39, %v769_v52 }
 0x1bd   : > { %892 = vadd.xlane.f32.xlu1 %v891_v54 }
 0x1be   : > { %v771_v55 = vmul.f32 %v770_v53, %v770_v53 }
 0x1c0   : > { %v772_v56 = vsel %vm571_vm1, %v771_v55, 0.0 }
 0x1c1   : > { %773 = vadd.xlane.f32.xlu0 %v772_v56 }
 0x246   : > { %v654_v63 = vpop.xlane.xlu1 %653 }
 0x247   : > { %v655_v2 = vmul.f32 0.03125, %v654_v63 }
 0x249   : > { %v656_v3 = vadd.f32 1e-05, %v655_v2 }
 0x24a   : > { %v893_v4 = vpop.xlane.xlu1 %892 }
 0x24b   : > { %1927 = vrsqrt.f32 %v656_v3  ;;  %v894_v5 = vmul.f32 0.03125, %v893_v4 }
 0x24d   : > { %v895_v6 = vadd.f32 1e-05, %v894_v5  ;;  %v1005_v5 = vld [vmem:[#allocation2 + $0x20] sm:$0xff] }
 0x24e   : > { %v774_v7 = vpop.xlane.xlu0 %773 }
 0x24f   : > { %1929 = vrsqrt.f32 %v895_v6  ;;  %v775_v8 = vmul.f32 0.03125, %v774_v7  ;;  %v1006_v6 = vld [vmem:[#allocation2 + $0x28] sm:$0xff] }
 0x250   : > { %v1824_v11 = vpack.c.bf16 %v1006_v6, %v1005_v5  ;;  %v1280_v6 = vld [vmem:[%s2501_s9] sm:$0xff] }
 0x251   : > { %v776_v10 = vadd.f32 1e-05, %v775_v8 }
 0x253   : > { %1931 = vrsqrt.f32 %v776_v10 }
 0x255   : > { %v1928_v13 = vpop.eup %1927 }
 0x256   : > { %v658_v15 = vmul.f32 %v1928_v13, %v650_v46  ;;  %v1007_v13 = vld [vmem:[#allocation2 + $0x30] sm:$0xff] }
 0x258   : > { %v663_v18 = vmul.f32 %v662_v12, %v658_v15 }
 0x259   : > { %v1930_v19 = vpop.eup %1929 }
 0x25a   : > { %v668_v21 = vadd.f32 %v667_v14, %v663_v18  ;;  %v897_v22 = vmul.f32 %v1930_v19, %v889_v47  ;;  %v1008_v14 = vld [vmem:[#allocation2 + $0x38] sm:$0xff] }
 0x25b   : > { %v1827_v19 = vpack.c.bf16 %v1008_v14, %v1007_v13 }
 0x25c   : > { %v670_v26 = vmul.f32 0.044715, %v668_v21  ;;  %v902_v27 = vmul.f32 %v901_v17, %v897_v22  ;;  %v669_v47 = vmul.f32 0.5, %v668_v21  ;;  %v1085_v22 = vld [vmem:[#allocation2 + $0x48] sm:$0xff] }
 0x25d   : > { %v1932_v28 = vpop.eup %1931 }
 0x25e   : > { %v671_v30 = vmul.f32 %v670_v26, %v668_v21  ;;  %v907_v31 = vadd.f32 %v906_v20, %v902_v27  ;;  %v778_v33 = vmul.f32 %v1932_v28, %v770_v53 }
 0x260   : > { %v909_v23 = vmul.f32 0.044715, %v907_v31  ;;  %v783_v34 = vmul.f32 %v782_v24, %v778_v33  ;;  %v672_v35 = vmul.f32 %v671_v30, %v668_v21  ;;  %v908_v52 = vmul.f32 0.5, %v907_v31  ;;  %v1087_v30 = vld [vmem:[#allocation2 + $0x58] sm:$0xff] }
 0x262   : > { %v910_v36 = vmul.f32 %v909_v23, %v907_v31  ;;  %v788_v37 = vadd.f32 %v787_v29, %v783_v34  ;;  %v673_v38 = vadd.f32 %v672_v35, %v668_v21  ;;  %v1084_v21 = vld [vmem:[#allocation2 + $0x40] sm:$0xff]  ;;  %v1086_v29 = vld [vmem:[#allocation2 + $0x50] sm:$0xff] }
 0x263   : > { %v1830_v27 = vpack.c.bf16 %v1085_v22, %v1084_v21  ;;  %v1833_v33 = vpack.c.bf16 %v1087_v30, %v1086_v29  ;;  %v1171_v35 = vld [vmem:[%s2499_s7] sm:$0xff] }
 0x264   : > { %v790_v39 = vmul.f32 0.044715, %v788_v37  ;;  %v674_v25 = vmul.f32 0.7978846, %v673_v38  ;;  %v911_v40 = vmul.f32 %v910_v36, %v907_v31  ;;  %v789_v58 = vmul.f32 0.5, %v788_v37  ;;  %v1172_v36 = vld [vmem:[%s2499_s7 + $0x8] sm:$0xff] }
 0x265   : > { %v1836_v38 = vpack.c.bf16 %v1172_v36, %v1171_v35  ;;  %v1407_v35 = vld [vmem:[%s2505_s13 + $0x18] sm:$0xff] }
 0x266   : > { %v791_v41 = vmul.f32 %v790_v39, %v788_v37  ;;  %1933 = vtanh.f32 %v674_v25  ;;  %v912_v42 = vadd.f32 %v911_v40, %v907_v31  ;;  %v1174_v39 = vld [vmem:[%s2499_s7 + $0x18] sm:$0xff]  ;;  %v925_v40 = vld [vmem:[%s2498_s6] sm:$0x1] }
 0x267   : > { %1837 = vmatpush3.bf16.msra.mxu0 %v1836_v38  ;;  %v1409_v38 = vld [vmem:[%s2505_s13 + $0x28] sm:$0xff] }
 0x268   : > { %v792_v43 = vmul.f32 %v791_v41, %v788_v37  ;;  %v913_v44 = vmul.f32 0.7978846, %v912_v42  ;;  %1838 = vmatprep.subr.bf16.mxu0 %v2050_v0 }
 0x26a   : > { %v793_v45 = vadd.f32 %v792_v43, %v788_v37  ;;  %1935 = vtanh.f32 %v913_v44  ;;  %v1173_v37 = vld [vmem:[%s2499_s7 + $0x10] sm:$0xff] }
 0x26b   : > { %v1839_v25 = vpack.c.bf16 %v1174_v39, %v1173_v37  ;;  %v1408_v37 = vld [vmem:[%s2505_s13 + $0x20] sm:$0xff] }
 0x26c   : > { %v794_v32 = vmul.f32 0.7978846, %v793_v45  ;;  %v1854_v39 = vpack.c.bf16 %v1409_v38, %v1408_v37 }
 0x26d   : > { %1840 = vmatpush3.bf16.msra.mxu0 %v1839_v25  ;;  %v1410_v25 = vld [vmem:[%s2505_s13 + $0x30] sm:$0xff] }
 0x26e   : > { %1937 = vtanh.f32 %v794_v32  ;;  %1841 = vmatprep.subr.bf16.mxu0 %v2050_v0 }
 0x270   : > { %v1934_v46 = vpop.eup %1933 }
 0x271   : > { %v676_v48 = vadd.f32 1.0, %v1934_v46 }
 0x273   : > { %v2328_v49 = vmul.f32 %v676_v48, %v669_v47 }
 0x274   : > { %v1936_v50 = vpop.eup %1935 }
 0x275   : > { %v678_v51 = vsel %vm571_vm1, %v2328_v49, 0.0  ;;  %v915_v53 = vadd.f32 1.0, %v1936_v50 }
 0x276   : > { %v679_v54 = vrot.slane %v678_v51, 4 }
 0x277   : > { %v2332_v55 = vmul.f32 %v915_v53, %v908_v52  ;;  %v1175_v53 = vld [vmem:[%s2500_s8] sm:$0x1] }
 0x278   : > { %v1938_v56 = vpop.eup %1937  ;;  %v680_v57 = vadd.f32 %v679_v54, %v678_v51 }
 0x279   : > { %v796_v59 = vadd.f32 1.0, %v1938_v56  ;;  %v917_v60 = vsel %vm571_vm1, %v2332_v55, 0.0 }
 0x27a   : > { %v681_v61 = vrot.slane %v680_v57, 2  ;;  %v918_v62 = vrot.slane %v917_v60, 4 }
 0x27b   : > { %v2336_v63 = vmul.f32 %v796_v59, %v789_v58 }
 0x27c   : > { %v682_v2 = vadd.f32 %v681_v61, %v680_v57  ;;  %v919_v8 = vadd.f32 %v918_v62, %v917_v60 }
 0x27d   : > { %v798_v3 = vsel %vm571_vm1, %v2336_v63, 0.0 }
 0x27e   : > { %v683_v4 = vrot.slane %v682_v2, 1  ;;  %v799_v7 = vrot.slane %v798_v3, 4  ;;  %v920_v17 = vrot.slane %v919_v8, 2 }
 0x280   : > { %v684_v9 = vadd.f32 %v683_v4, %v682_v2  ;;  %v800_v10 = vadd.f32 %v799_v7, %v798_v3  ;;  %v921_v24 = vadd.f32 %v920_v17, %v919_v8  ;;  %v1281_v7 = vld [vmem:[%s2501_s9 + $0x8] sm:$0xff] }
 0x281   : > { %v1842_v8 = vpack.c.bf16 %v1281_v7, %v1280_v6 }
 0x282   : > { %v686_v12 = vmul.f32 0.125, %v684_v9  ;;  %v801_v15 = vrot.slane %v800_v10, 2  ;;  %v922_v31 = vrot.slane %v921_v24, 1  ;;  %v1282_v9 = vld [vmem:[%s2501_s9 + $0x10] sm:$0xff] }
 0x284   : > { %1734 = vmatmul.mubr.msk.f32.vlgmr.msra.gmra.mrb[4].mxu1 %vm571_vm1, %v686_v12  ;;  %v802_v18 = vadd.f32 %v801_v15, %v800_v10  ;;  %v923_v23 = vadd.f32 %v922_v31, %v921_v24  ;;  %v1283_v10 = vld [vmem:[%s2501_s9 + $0x18] sm:$0xff]  ;;  %v1631_v24 = vld [vmem:[%s2502_s10] ss:$0 sm:$0xff] }
 0x285   : > { %1825 = vmatpush3.bf16.msra.mxu1 %v1824_v11  ;;  %1744 = vmatprep.mubr.msk.f32.mxu1 %vm2051_vm0, %v2052_v1  ;;  %v1845_v11 = vpack.c.bf16 %v1283_v10, %v1282_v9 }
 0x286   : > { %1826 = vmatprep.subr.bf16.mxu1 %v2050_v0  ;;  %v803_v20 = vrot.slane %v802_v18, 1  ;;  %v924_v34 = vmul.f32 0.125, %v923_v23  ;;  %v1406_v23 = vld [vmem:[%s2505_s13 + $0x10] sm:$0xff] }
 0x287   : > { %v1851_v36 = vpack.c.bf16 %v1407_v35, %v1406_v23 }
 0x288   : > { %v804_v26 = vadd.f32 %v803_v20, %v802_v18 }
 0x289   : > { %1828 = vmatpush3.bf16.msra.mxu1 %v1827_v19 }
 0x28a   : > { %1829 = vmatprep.subr.bf16.mxu1 %v2050_v0  ;;  %v805_v28 = vmul.f32 0.125, %v804_v26 }
 0x28c   : > { %1745 = vmatmul.mubr.msk.f32.vlgmr.msra.gmra.mrb[4].mxu1 %vm571_vm1, %v805_v28 }
 0x28d   : > { %1831 = vmatpush3.bf16.msra.mxu1 %v1830_v27  ;;  %1755 = vmatprep.mubr.msk.f32.mxu1 %vm2051_vm0, %v2052_v1 }
 0x28e   : > { %1832 = vmatprep.subr.bf16.mxu1 %v2050_v0 }
 0x291   : > { %1834 = vmatpush3.bf16.msra.mxu1 %v1833_v33  ;;  %v1405_v33 = vld [vmem:[%s2505_s13 + $0x8] sm:$0xff] }
 0x294   : > { %1756 = vmatmul.mubr.msk.f32.vlgmr.msra.gmra.mrb[4].mxu1 %vm571_vm1, %v924_v34 }
 0x367   : > { %v1157_v41 = vpop.f32.mrb[4].mxu1 }
 0x368   : > { %v1859_v42 = vadd.f32 %v1157_v41, %v925_v40  ;;  %v1757_v43 = vpop.f32.mrb[5].mxu1  ;;  %v1411_v40 = vld [vmem:[%s2505_s13 + $0x38] sm:$0xff] }
 0x369   : > { %v1857_v41 = vpack.c.bf16 %v1411_v40, %v1410_v25 }
 0x36a   : > { %v1163_v44 = vmul.f32 0.044715, %v1859_v42  ;;  %v1162_v50 = vmul.f32 0.5, %v1859_v42 }
 0x36c   : > { %v1164_v45 = vmul.f32 %v1859_v42, %v1163_v44 }
 0x36e   : > { %v1165_v32 = vmul.f32 %v1859_v42, %v1164_v45 }
 0x370   : > { %v1166_v46 = vadd.f32 %v1859_v42, %v1165_v32  ;;  %v1633_v32 = vld [vmem:[%s2503_s11] ss:$0 sm:$0xff] }
 0x372   : > { %v1167_v47 = vmul.f32 0.7978846, %v1166_v46 }
 0x374   : > { %1939 = vtanh.f32 %v1167_v47  ;;  %v1634_v47 = vld [vmem:[%s2504_s12] ss:$0 sm:$0xff] }
 0x37e   : > { %v1940_v48 = vpop.eup %1939 }
 0x37f   : > { %v1169_v51 = vadd.f32 1.0, %v1940_v48 }
 0x381   : > { %v1170_v52 = vmul.f32 %v1169_v51, %v1162_v50 }
 0x383   : > { %1767 = vmatmul.mubr.msk.f32.vlgmr.msra.gmra.mrb[2].mxu0 %vm571_vm1, %v1170_v52 }
 0x384   : > { %1777 = vmatprep.mubr.msk.f32.mxu0 %vm2051_vm0, %v2052_v1  ;;  %1843 = vmatpush3.bf16.msra.mxu0 %v1842_v8 }
 0x385   : > { %1844 = vmatprep.subr.bf16.mxu0 %v2050_v0 }
 0x388   : > { %1846 = vmatpush3.bf16.msra.mxu0 %v1845_v11 }
 0x389   : > { %1847 = vmatprep.subr.bf16.mxu0 %v2050_v0 }
 0x456   : > { %v1245_v54 = vpop.f32.mrb[2].mxu0 }
 0x457   : > { %v1246_v56 = vadd.f32 %v1245_v54, %v1175_v53  ;;  %v1768_v57 = vpop.f32.mrb[3].mxu0 }
 0x459   : > { %v1250_v58 = vsel %vm1249_vm2, %v1246_v56, -inf }
 0x45a   : > { %1251 = vmax.xlane.f32.xlu0 %v1250_v58 }
 0x4e7   : > { %v1252_v59 = vpop.xlane.xlu0 %1251 }
 0x4e8   : > { %v1253_v60 = vsub.f32 %v1246_v56, %v1252_v59 }
 0x4ea   : > { %v1254_v61 = vmul.f32 1.442695, %v1253_v60  ;;  %v1635_v60 = vld [vmem:[%s2506_s14] ss:$0 sm:$0xff] }
 0x4ec   : > { %1941 = vpow2.f32 %v1254_v61 }
 0x4f6   : > { %v1942_v62 = vpop.eup %1941 }
 0x4f7   : > { %v1256_v2 = vsel %vm1249_vm2, %v1942_v62, 0.0 }
 0x4f8   : > { %1257 = vadd.xlane.f32.xlu1 %v1256_v2 }
 0x585   : > { %v1258_v3 = vpop.xlane.xlu1 %1257 }
 0x586   : > { %1943 = vrcp.f32 %v1258_v3 }
 0x590   : > { %v1944_v4 = vpop.eup %1943 }
 0x591   : > { %v1260_v5 = vmul.f32 %v1944_v4, %v1942_v62 }
 0x593   : > { %1273 = vrot.lane.b32.xlu1 %v1260_v5, %s2053_s19  ;;  %1266 = vrot.lane.b32.xlu0 %v1260_v5, %s2054_s23  ;;  %1864 = vpush %v1260_v5  ;;  %s552_s23 = sand.u32 1, %s2037_s25  }
 0x594   : > { %s1614_s29 = sshll.u32 %s552_s23, 3  ;;  %s1524_s20 = scalar_lea.sflag [#allocation4], %s552_s23 }
 0x595   : > { %s554_s27 = scalar_lea.vmem [#allocation5], %s1614_s29  ;;  %s1983_s29 = sshll.u32 %s2055_s28, 4  ;;  %s1984_s29 = int_to_ptr.vmem [resolvable:$false] %s1983_s29 }
 0x596   : > { %s1537_s30 = sshll.u32 %s554_s27, 4  ;;  %s1985_s26 = scalar_lea.vmem %s1984_s29, 256  ;;  %s2451_s30 = int_to_ptr.vmem [resolvable:$true] %s1537_s30 }
 0x597   : > { %s1979_s22 = scalar_lea.vmem %s2451_s30, 128  ;;  %p1986_p2 = scmp.lt.s32.totalorder %s2451_s30, %s1984_s29 }
 0x598   : > { %p1980_p6 = scmp.ne.s32.totalorder %s2451_s30, %s1979_s22  ;;  %p1987_p3 = scmp.lt.s32.totalorder %s1985_s26, %s1979_s22 }
 0x59a   : > { %p1981_p10 = pnand %p1980_p6, %p2539_p9  ;;  %p1988_p4 = por %p1987_p3, %p1986_p2 }
 0x59c   : > { %p1982_p12 = pneg %p1981_p10 }
 0x59e   : > { %p1989_p7 = pnand %p1988_p4, %p1982_p12 }
 0x5c4   : > { %s1865_s24 = spop %1864 }
 0x5c5   : > { %v1263_v14 = vstv %s1865_s24 }
 0x5c6   : > { %v1265_v17 = vmul.f32 %v1263_v14, %v2328_v49 }
 0x605   : > { %v1274_v12 = vpop.permute.xlu1 %1273  ;;  %v1267_v13 = vpop.permute.xlu0 %1266 }
 0x606   : > { %1866 = vpush %v1267_v13  ;;  %v1637_v13 = vld [vmem:[%s2507_s15] ss:$0 sm:$0xff] }
 0x607   : > { %1868 = vpush %v1274_v12 }
 0x637   : > { %s1867_s18 = spop %1866 }
 0x638   : > { %v1269_v15 = vstv %s1867_s18  ;;  %s1869_s19 = spop %1868 }
 0x639   : > { %v1271_v18 = vmul.f32 %v1269_v15, %v2336_v63  ;;  %v1276_v19 = vstv %s1869_s19  ;;  %v1638_v15 = vld [vmem:[%s2508_s16] ss:$0 sm:$0xff]  ;;  %s2449_s19 = scalar_lea.hbm %s2509_s17, %s1640_s0 }
 0x63a   : > { %v1278_v21 = vmul.f32 %v1276_v19, %v2332_v55 }
 0x63b   : > { %v1272_v20 = vadd.f32 %v1271_v18, %v1265_v17 }
 0x63d   : > { %v1279_v22 = vadd.f32 %v1278_v21, %v1272_v20 }
 0x63f   : > { %1778 = vmatmul.mubr.msk.f32.vlgmr.msra.gmra.mrb[4].mxu0 %vm571_vm1, %v1279_v22 }
 0x640   : > { %1796 = vmatprep.mubr.msk.f32.mxu0 %vm2051_vm0, %v2052_v1  ;;  %v1404_v1 = vld [vmem:[%s2505_s13] sm:$0xff] }
 0x641   : > { %v1848_v34 = vpack.c.bf16 %v1405_v33, %v1404_v1 }
 0x643   : > { %1849 = vmatpush3.bf16.msra.mxu0 %v1848_v34 }
 0x644   : > { %1850 = vmatprep.subr.bf16.mxu0 %v2050_v0 }
 0x647   : > { %1852 = vmatpush3.bf16.msra.mxu0 %v1851_v36 }
 0x648   : > { %1853 = vmatprep.subr.bf16.mxu0 %v2050_v0 }
 0x64b   : > { %1855 = vmatpush3.bf16.msra.mxu0 %v1854_v39 }
 0x64c   : > { %1856 = vmatprep.subr.bf16.mxu0 %v2050_v0 }
 0x64f   : > { %1858 = vmatpush3.bf16.msra.mxu0 %v1857_v41 }
 0x712   : > { %v1360_v26 = vpop.f32.mrb[4].mxu0 }
 0x713   : > { %v1361_v27 = vadd.f32 %v1631_v24, %v1360_v26  ;;  %v1779_v49 = vpop.f32.mrb[5].mxu0 }
 0x715   : > { %v1367_v63 = vsel %vm1366_vm3, %v1361_v27, 0.0 }
 0x716   : > { %1368 = vadd.xlane.f32.xlu1 %v1367_v63 }
 0x7a3   : > { %v1369_v28 = vpop.xlane.xlu1 %1368 }
 0x7a4   : > { %v1371_v29 = vmul.f32 0.015625, %v1369_v28 }
 0x7a6   : > { %v1372_v55 = vsub.f32 %v1361_v27, %v1371_v29 }
 0x7a8   : > { %v1373_v30 = vmul.f32 %v1372_v55, %v1372_v55 }
 0x7aa   : > { %v1374_v31 = vsel %vm1366_vm3, %v1373_v30, 0.0 }
 0x7ab   : > { %1375 = vadd.xlane.f32.xlu0 %v1374_v31 }
 0x838   : > { %v1376_v42 = vpop.xlane.xlu0 %1375 }
 0x839   : > { %v1377_v43 = vmul.f32 0.015625, %v1376_v42 }
 0x83b   : > { %v1378_v44 = vadd.f32 1e-05, %v1377_v43 }
 0x83d   : > { %1945 = vrsqrt.f32 %v1378_v44 }
 0x847   : > { %v1946_v45 = vpop.eup %1945 }
 0x848   : > { %v1380_v46 = vmul.f32 %v1946_v45, %v1372_v55 }
 0x84a   : > { %v1387_v48 = vmul.f32 %v1633_v32, %v1380_v46 }
 0x84c   : > { %v1394_v50 = vadd.f32 %v1634_v47, %v1387_v48 }
 0x84e   : > { %v1396_v51 = vmul.f32 0.044715, %v1394_v50  ;;  %v1395_v57 = vmul.f32 0.5, %v1394_v50 }
 0x850   : > { %v1397_v52 = vmul.f32 %v1396_v51, %v1394_v50 }
 0x852   : > { %v1398_v0 = vmul.f32 %v1397_v52, %v1394_v50 }
 0x854   : > { %v1399_v53 = vadd.f32 %v1398_v0, %v1394_v50 }
 0x856   : > { %v1400_v54 = vmul.f32 0.7978846, %v1399_v53 }
 0x858   : > { %1947 = vtanh.f32 %v1400_v54 }
 0x862   : > { %v1948_v56 = vpop.eup %1947 }
 0x863   : > { %v1402_v58 = vadd.f32 1.0, %v1948_v56 }
 0x865   : > { %v1403_v59 = vmul.f32 %v1402_v58, %v1395_v57 }
 0x867   : > { %1797 = vmatmul.mubr.msk.f32.vlgmr.msra.gmra.mrb[6].mxu0 %vm1366_vm3, %v1403_v59 }
 0x93a   : > { %v1488_v61 = vpop.f32.mrb[6].mxu0 }
 0x93b   : > { %v1489_v62 = vadd.f32 %v1635_v60, %v1488_v61  ;;  %v1798_v2 = vpop.f32.mrb[7].mxu0 }
 0x93d   : > { %v1494_v3 = vsel %vm571_vm1, %v1489_v62, 0.0 }
 0x93e   : > { %1495 = vadd.xlane.f32.xlu0 %v1494_v3 }
 0x9cb   : > { %v1496_v4 = vpop.xlane.xlu0 %1495 }
 0x9cc   : > { %v1497_v5 = vmul.f32 0.03125, %v1496_v4 }
 0x9ce   : > { %v1498_v6 = vsub.f32 %v1489_v62, %v1497_v5 }
 0x9d0   : > { %v1499_v7 = vmul.f32 %v1498_v6, %v1498_v6 }
 0x9d2   : > { %v1500_v8 = vsel %vm571_vm1, %v1499_v7, 0.0 }
 0x9d3   : > { %1501 = vadd.xlane.f32.xlu1 %v1500_v8 }
 0xa60   : > { %v1502_v9 = vpop.xlane.xlu1 %1501 }
 0xa61   : > { %v1503_v10 = vmul.f32 0.03125, %v1502_v9 }
 0xa63   : > { %v1504_v11 = vadd.f32 1e-05, %v1503_v10 }
 0xa65   : > { %1949 = vrsqrt.f32 %v1504_v11 }
 0xa6f   : > { %v1950_v12 = vpop.eup %1949 }
 0xa70   : > { %v1506_v14 = vmul.f32 %v1950_v12, %v1498_v6 }
 0xa72   : > { %v1513_v17 = vmul.f32 %v1637_v13, %v1506_v14 }
 0xa74   : > { %v1520_v18 = vadd.f32 %v1638_v15, %v1513_v17 }
 0xa76   : > { %v1521_v19 = vadd.f32 %v1520_v18, %v2272_v16 }
 0xa78   : > { %1522 = vst.msk [vmem:[%s554_s27] sm:$0xff] %vm571_vm1, %v1521_v19 }
 0xa79   : > { %1992 = shalt.err (!%p1989_p7)
}
 0xa7a   : > { %s1993_s23 = scalar_lea.hbm %s2449_s19, 128  ;;  %s1997_s27 = scalar_lea.hbm %s2509_s17, 256 }
 0xa7b   : > { %p1994_p8 = scmp.ne.s32.totalorder %s2449_s19, %s1993_s23  ;;  %p1998_p1 = scmp.lt.u32.totalorder %s2449_s19, %s2509_s17 }
 0xa7c   : > { %p1999_p0 = scmp.lt.u32.totalorder %s1997_s27, %s1993_s23  ;;  %p2001_p6 = scmp.lt.u32.totalorder %s1993_s23, %s2449_s19 }
 0xa7d   : > { %p1995_p11 = pnand %p1994_p8, %p2539_p9 }
 0xa7e   : > { %p2000_p5 = por %p1999_p0, %p1998_p1 }
 0xa7f   : > { %p1996_p13 = pneg %p1995_p11 }
 0xa80   : > { %p2002_p10 = por %p2001_p6, %p2000_p5 }
 0xa82   : > { %p2003_p12 = pnand %p2002_p10, %p1996_p13 }
 0xa84   : > { %2006 = shalt.err (!%p2003_p12)
}
 0xa85   : > { %1874 = dma.vmem_to_hbm [thread:$0]  (%p2539_p9), %s2451_s30, 128, %s2449_s19, %s1524_s20  }
 0xa86 PF: > { %s2540_s22 = sld [smem:[#allocation10_spill]]  ;;  %s2541_s28 = sld [smem:[#allocation8_spill]] }
 0xa87   : > { %s2542_s29 = sld [smem:[#allocation13_spill]] }
 0xa8c   : > { %p1886_p2 = scmp.ge.s32.totalorder %s2540_s22, 2  ;;  %s1549_s26 = sand.u32 1, %s2541_s28  }
 0xa8d   : > { %p2543_p3 = scmp.ne.s32.totalorder %s2542_s29, 0  ;;  %s1550_s5 = scalar_lea.sflag [#allocation4], %s1549_s26 }
 0xa8f   : > { %p1881_p4 = pnand %p1886_p2, %p2543_p3 }
 0xa91   : > { %2028 = dma.done.wait (!%p1881_p4), %s1550_s5, 128  }
 0xa92   : > { %2030 = vsyncadd (!%p1881_p4), %s1550_s5, 4294967168  ;;  %s2544_s27 = sld [smem:[#allocation11_spill]]  ;;  %s2545_s23 = sld [smem:[#allocation9_spill]] }
 0xa93   : > { %s2546_s26 = sld [smem:[#allocation12_spill]]  ;;  %s2547_s24 = smov %s2037_s25 }
 0xa98   : > { %p28_p7 = scmp.ge.s32.totalorder %s2544_s27, 4   ;;  %s2548_s25 = smov %s2545_s23 }
 0xa9a   :  { %30 = sbr.rel (!%p28_p7) target bundleno = 8 (0x8), region = 132 }
 0xaa1   :  { %1555 = vsyncpa [#allocation3], 1 }
 0xaa2   :  { %1557 = vsyncpa [#allocation3 + $0x1], 1 }
 0xaa3   :  { %1558 = vsyncpa [#allocation4], 1 }
 0xaa4   :  { %1560 = vsyncpa [#allocation4 + $0x1], 1 }

</bundles_post_ra>
